<compile_context>
chip_gen: v7x
topology: tpu7x:2x2x1
jax: 0.10.0
libtpu: 0.0.40
codegen_flags: <defaults>
</compile_context>

<pallas_src>
import jax
import jax.numpy as jnp
import numpy as np
from jax import lax
from jax.experimental import pallas as pl
from jax.experimental.pallas import tpu as pltpu


# ---------------------------------------------------------------------------
# helpers
# ---------------------------------------------------------------------------
def _round_up(x, m):
    return (x + m - 1) // m * m


def _vmem_limit_bytes():
    """Explicit VMEM budget derived from the actual chip (64 MiB/TC on v7x,
    128 MiB on v5e/v6e), with headroom for compiler scratch / double buffers."""
    cap = 64 * 1024 * 1024  # conservative fallback (v7x per-TC physical VMEM)
    try:
        cap = int(pltpu.get_tpu_info().vmem_capacity_bytes)
    except Exception:
        pass
    return int(min(cap * 7 // 8, 120 * 1024 * 1024))


def _pick_row_tile(n8, vmem_limit):
    """Row-tile TM for the streamed aggregation: one grid step streams a
    (TM, Npad) bf16 tile of A (double buffered); keep the pair within ~1/4 of
    the VMEM budget.  Power of two, multiple of 8, capped at 512."""
    budget = max(vmem_limit // 4, 1 << 20)
    cap = max(8, budget // (2 * 2 * n8))
    tm = 8
    while tm * 2 <= min(cap, 512, n8):
        tm *= 2
    return tm


# ---------------------------------------------------------------------------
# resident-A path: the whole forward in one kernel (small/medium graphs)
# ---------------------------------------------------------------------------
def _gcn_resident_kernel(h0_ref, an_ref, pool_ref,
                         w1, b1, w2, b2, w3, b3, w4, b4, w5, b5,
                         mw1, mb1, mw2, mb2, out_ref):
    a = an_ref[...]                              # [Npad, Npad] bf16, norm + self loop folded

    def gcn_layer(h_bf16, w_ref, b_ref):
        # Linear + aggregation, both bf16 operands with fp32 MXU accumulation.
        hw = jnp.dot(h_bf16, w_ref[...], preferred_element_type=jnp.float32)
        agg = jnp.dot(a, hw.astype(jnp.bfloat16), preferred_element_type=jnp.float32)
        return agg + b_ref[...]                  # bias / ReLU stay fp32

    # dropout(p=0.5) is identity in eval mode.
    h = jnp.maximum(gcn_layer(h0_ref[...], w1, b1), 0.0).astype(jnp.bfloat16)
    h = jnp.maximum(gcn_layer(h, w2, b2), 0.0).astype(jnp.bfloat16)
    h = jnp.maximum(gcn_layer(h, w3, b3), 0.0).astype(jnp.bfloat16)
    h = jnp.maximum(gcn_layer(h, w4, b4), 0.0).astype(jnp.bfloat16)
    h = gcn_layer(h, w5, b5).astype(jnp.bfloat16)        # conv5: no relu before pooling

    # global_add_pool: one-hot pool (exact in bf16) @ h, fp32 accumulation.
    g = jnp.dot(pool_ref[...], h, preferred_element_type=jnp.float32)
    # MLP head: Linear -> ReLU -> Linear.
    g = jnp.maximum(
        jnp.dot(g.astype(jnp.bfloat16), mw1[...],
                preferred_element_type=jnp.float32) + mb1[...], 0.0)
    # TODO(synk): output last dim (num_classes=2) is lane-sparse; pad to a
    # lane-dense slab if num_graphs / num_classes ever grow large.
    out_ref[...] = jnp.dot(g.astype(jnp.bfloat16), mw2[...],
                           preferred_element_type=jnp.float32) + mb2[...]


# ---------------------------------------------------------------------------
# streamed path: per-layer row-tiled aggregation (adjacency never resident)
# ---------------------------------------------------------------------------
def _linear_kernel(x_ref, w_ref, o_ref):
    o_ref[...] = jnp.dot(x_ref[...], w_ref[...],
                         preferred_element_type=jnp.float32).astype(o_ref.dtype)


def _linear(x, w, vmem_limit):
    n = x.shape[0]
    h = w.shape[1]
    return pl.pallas_call(
        _linear_kernel,
        out_shape=jax.ShapeDtypeStruct((n, h), jnp.bfloat16),
        in_specs=[pl.BlockSpec(memory_space=pltpu.MemorySpace.VMEM)] * 2,
        out_specs=pl.BlockSpec(memory_space=pltpu.MemorySpace.VMEM),
        compiler_params=pltpu.CompilerParams(vmem_limit_bytes=vmem_limit),
    )(x, w)


def _agg_kernel_relu(a_ref, hw_ref, b_ref, o_ref):
    agg = jnp.dot(a_ref[...], hw_ref[...],
                  preferred_element_type=jnp.float32) + b_ref[...]
    o_ref[...] = jnp.maximum(agg, 0.0).astype(o_ref.dtype)


def _agg_kernel_norelu(a_ref, hw_ref, b_ref, o_ref):
    agg = jnp.dot(a_ref[...], hw_ref[...],
                  preferred_element_type=jnp.float32) + b_ref[...]
    o_ref[...] = agg.astype(o_ref.dtype)


def _aggregate(a_norm, hw, b, relu, tm, vmem_limit):
    npad, h = hw.shape
    kernel = _agg_kernel_relu if relu else _agg_kernel_norelu
    cost = pl.CostEstimate(flops=2 * npad * npad * h, transcendentals=0,
                           bytes_accessed=2 * npad * npad + 4 * npad * h)
    return pl.pallas_call(
        kernel,
        out_shape=jax.ShapeDtypeStruct((npad, h), jnp.bfloat16),
        grid=(npad // tm,),
        in_specs=[
            pl.BlockSpec((tm, npad), lambda i: (i, 0)),   # adjacency row tile (streamed)
            pl.BlockSpec((npad, h), lambda i: (0, 0)),    # hw stays resident (tiny)
            pl.BlockSpec((1, h), lambda i: (0, 0)),       # bias
        ],
        out_specs=pl.BlockSpec((tm, h), lambda i: (i, 0)),
        compiler_params=pltpu.CompilerParams(
            dimension_semantics=("parallel",),            # row tiles independent -> megacore on v7x
            vmem_limit_bytes=vmem_limit),
        cost_estimate=cost,
    )(a_norm, hw, b)


def _pool_mlp_kernel(pool_ref, h_ref, mw1, mb1, mw2, mb2, out_ref):
    g = jnp.dot(pool_ref[...], h_ref[...], preferred_element_type=jnp.float32)
    g = jnp.maximum(
        jnp.dot(g.astype(jnp.bfloat16), mw1[...],
                preferred_element_type=jnp.float32) + mb1[...], 0.0)
    out_ref[...] = jnp.dot(g.astype(jnp.bfloat16), mw2[...],
                           preferred_element_type=jnp.float32) + mb2[...]


def _pool_mlp(pool, h, mw1, mb1, mw2, mb2, num_graphs, num_classes, vmem_limit):
    return pl.pallas_call(
        _pool_mlp_kernel,
        out_shape=jax.ShapeDtypeStruct((num_graphs, num_classes), jnp.float32),
        in_specs=[pl.BlockSpec(memory_space=pltpu.MemorySpace.VMEM)] * 6,
        out_specs=pl.BlockSpec(memory_space=pltpu.MemorySpace.VMEM),
        compiler_params=pltpu.CompilerParams(vmem_limit_bytes=vmem_limit),
    )(pool, h, mw1, mb1, mw2, mb2)


# ---------------------------------------------------------------------------
# forward
# ---------------------------------------------------------------------------
def gcn_l5_forward(x, edge_index, edge_weight, batch, num_graphs, params,
                   *, force_streamed=False, row_tile=None):
    """x: [N, F] f32; edge_index: [2, E] int32 (src, dst); edge_weight: [E] f32;
    batch: [N] int32 graph ids."""
    N = x.shape[0]
    emb_dim = params["emb"].shape[1]
    hidden = params["w1"].shape[1]
    num_classes = params["mlp_b2"].shape[-1]

    vmem_limit = _vmem_limit_bytes()

    # ---- pick execution path (resident A vs streamed row tiles), generation-aware.
    n8 = _round_up(N, 8)
    resident_bytes = (2 * n8 * n8 + 2 * num_graphs * n8
                      + 2 * n8 * emb_dim + 12 * n8 * hidden)
    use_resident = (not force_streamed) and (resident_bytes <= vmem_limit // 3)

    if use_resident:
        npad = n8
        tm = None
    else:
        tm = row_tile if row_tile is not None else _pick_row_tile(n8, vmem_limit)
        npad = _round_up(N, tm)

    # ---- glue (plain XLA): dense adjacency with normalization + self loop
    # folded in, pooling matrix, embedding lookup.
    # TODO(synk): for large sparse graphs replace the dense N x N adjacency with
    # a CSR / edge-list aggregation (PrefetchScalarGridSpec + segment sums).
    adj = jnp.zeros((N, N), jnp.float32).at[edge_index[1], edge_index[0]].add(
        edge_weight)                                         # A[dst, src]
    a_tilde = adj + jnp.eye(N, dtype=jnp.float32)            # add self loops (weight 1)
    deg = jnp.sum(a_tilde, axis=1, keepdims=True)            # >= 1, no zero guard needed
    dinv = lax.rsqrt(deg)                                    # [N, 1] fp32
    a_norm = (dinv * a_tilde * dinv.T).astype(jnp.bfloat16)  # D^-1/2 (A+I) D^-1/2
    a_norm = jnp.pad(a_norm, ((0, npad - N), (0, npad - N)))

    h0 = params["emb"][jnp.argmax(x, axis=1)]                # embedding lookup (XLA gather)
    h0 = jnp.pad(h0, ((0, npad - N), (0, 0))).astype(jnp.bfloat16)

    batch_pad = jnp.full((npad,), num_graphs, jnp.int32).at[:N].set(
        batch.astype(jnp.int32))                             # padded nodes -> invalid graph id
    pool = (batch_pad[None, :] ==
            jnp.arange(num_graphs, dtype=jnp.int32)[:, None]).astype(jnp.bfloat16)

    bf = lambda k: params[k].astype(jnp.bfloat16)
    f32 = lambda k: params[k].astype(jnp.float32)

    if use_resident:
        args = [h0, a_norm, pool,
                bf("w1"), f32("b1"), bf("w2"), f32("b2"), bf("w3"), f32("b3"),
                bf("w4"), f32("b4"), bf("w5"), f32("b5"),
                bf("mlp_w1"), f32("mlp_b1"), bf("mlp_w2"), f32("mlp_b2")]
        cost = pl.CostEstimate(
            flops=10 * npad * npad * hidden + 2 * npad * emb_dim * hidden,
            transcendentals=0,
            bytes_accessed=2 * npad * npad + 2 * num_graphs * npad + 2 * npad * emb_dim)
        return pl.pallas_call(
            _gcn_resident_kernel,
            out_shape=jax.ShapeDtypeStruct((num_graphs, num_classes), jnp.float32),
            in_specs=[pl.BlockSpec(memory_space=pltpu.MemorySpace.VMEM)] * len(args),
            out_specs=pl.BlockSpec(memory_space=pltpu.MemorySpace.VMEM),
            compiler_params=pltpu.CompilerParams(vmem_limit_bytes=vmem_limit),
            cost_estimate=cost,
        )(*args)

    # Streamed path: per layer, a tiny linear kernel then the row-tiled
    # aggregation that streams (TM, Npad) adjacency tiles from HBM.
    h = h0
    for k in range(1, 6):
        hw = _linear(h, bf(f"w{k}"), vmem_limit)             # [npad, hidden] bf16
        h = _aggregate(a_norm, hw, f32(f"b{k}"), relu=(k < 5),
                       tm=tm, vmem_limit=vmem_limit)         # [npad, hidden] bf16
    return _pool_mlp(pool, h, bf("mlp_w1"), f32("mlp_b1"),
                     bf("mlp_w2"), f32("mlp_b2"),
                     num_graphs, num_classes, vmem_limit)


# ---------------------------------------------------------------------------
# params / reference / test
# ---------------------------------------------------------------------------
def init_params(key, num_node_features, embed_dim, hidden, num_classes):
    ks = jax.random.split(key, 10)

    def lin(k, fan_in, fan_out):
        return jax.random.normal(k, (fan_in, fan_out), jnp.float32) / jnp.sqrt(fan_in)

    return {
        # TODO(synk): original loads ./data/embeddings.npy; deterministic random init instead.
        "emb": jax.random.normal(ks[0], (num_node_features, embed_dim), jnp.float32),
        "w1": lin(ks[1], embed_dim, hidden), "b1": jnp.zeros((1, hidden), jnp.float32),
        "w2": lin(ks[2], hidden, hidden),    "b2": jnp.zeros((1, hidden), jnp.float32),
        "w3": lin(ks[3], hidden, hidden),    "b3": jnp.zeros((1, hidden), jnp.float32),
        "w4": lin(ks[4], hidden, hidden),    "b4": jnp.zeros((1, hidden), jnp.float32),
        "w5": lin(ks[5], hidden, hidden),    "b5": jnp.zeros((1, hidden), jnp.float32),
        "mlp_w1": lin(ks[6], hidden, hidden),
        "mlp_b1": 0.01 * jax.random.normal(ks[7], (1, hidden), jnp.float32),
        "mlp_w2": lin(ks[8], hidden, num_classes),
        "mlp_b2": 0.01 * jax.random.normal(ks[9], (1, num_classes), jnp.float32),
    }


def _reference_forward(x, edge_index, edge_weight, batch, num_graphs, params):
    """Pure-JAX fp32 reference mirroring PyG GCNConv eval semantics."""
    N = x.shape[0]
    adj = jnp.zeros((N, N), jnp.float32).at[edge_index[1], edge_index[0]].add(edge_weight)
    a_tilde = adj + jnp.eye(N, dtype=jnp.float32)
    dinv = lax.rsqrt(jnp.sum(a_tilde, axis=1, keepdims=True))
    a_norm = dinv * a_tilde * dinv.T
    h = params["emb"][jnp.argmax(x, axis=1)]
    for k in range(1, 6):
        h = a_norm @ (h @ params[f"w{k}"]) + params[f"b{k}"]
        if k < 5:
            h = jnp.maximum(h, 0.0)
    pool = (batch[None, :] == jnp.arange(num_graphs)[:, None]).astype(jnp.float32)
    g = pool @ h
    g = jnp.maximum(g @ params["mlp_w1"] + params["mlp_b1"], 0.0)
    return g @ params["mlp_w2"] + params["mlp_b2"]


if __name__ == "__main__":
    key = jax.random.PRNGKey(0)
    k_x, k_w, k_p = jax.random.split(key, 3)

    # Small synthetic batched graph: 2 graphs x 8 nodes, 8 node features, 16 hidden, 2 classes.
    num_node_features, embed_dim, hidden, num_classes = 8, 50, 16, 2
    nodes_per_graph, num_graphs = 8, 2
    N = nodes_per_graph * num_graphs

    x = jax.random.normal(k_x, (N, num_node_features), jnp.float32)
    batch = jnp.repeat(jnp.arange(num_graphs, dtype=jnp.int32), nodes_per_graph)

    # Ring edges (both directions) inside each graph.
    src, dst = [], []
    for g in range(num_graphs):
        base = g * nodes_per_graph
        for i in range(nodes_per_graph):
            a, b = base + i, base + (i + 1) % nodes_per_graph
            src += [a, b]
            dst += [b, a]
    edge_index = jnp.array([src, dst], dtype=jnp.int32)           # [2, E]
    edge_weight = jax.random.uniform(k_w, (edge_index.shape[1],),
                                     jnp.float32, minval=0.5, maxval=1.5)

    params = init_params(k_p, num_node_features, embed_dim, hidden, num_classes)

    ref = jax.block_until_ready(
        _reference_forward(x, edge_index, edge_weight, batch, num_graphs, params))

    # Default dispatch (resident-A single kernel at this size).
    out = gcn_l5_forward(x, edge_index, edge_weight, batch, num_graphs, params)
    out = jax.block_until_ready(out)
    assert out.shape == (num_graphs, num_classes)
    np.testing.assert_allclose(np.asarray(out), np.asarray(ref), rtol=0.1, atol=0.1)

    # Also exercise the streamed / row-tiled large-graph path (2 row tiles of 8).
    out_s = gcn_l5_forward(x, edge_index, edge_weight, batch, num_graphs, params,
                           force_streamed=True, row_tile=8)
    out_s = jax.block_until_ready(out_s)
    np.testing.assert_allclose(np.asarray(out_s), np.asarray(ref), rtol=0.1, atol=0.1)

    print("KERNEL_OK")
</pallas_src>

<mosaic_0001>
module attributes {stable_mosaic.version = 11 : i64} {
  func.func @_gcn_resident_kernel(%arg0: memref<16x50xbf16, #tpu.memory_space<vmem>>, %arg1: memref<16x16xbf16, #tpu.memory_space<vmem>>, %arg2: memref<2x16xbf16, #tpu.memory_space<vmem>>, %arg3: memref<50x16xbf16, #tpu.memory_space<vmem>>, %arg4: memref<1x16xf32, #tpu.memory_space<vmem>>, %arg5: memref<16x16xbf16, #tpu.memory_space<vmem>>, %arg6: memref<1x16xf32, #tpu.memory_space<vmem>>, %arg7: memref<16x16xbf16, #tpu.memory_space<vmem>>, %arg8: memref<1x16xf32, #tpu.memory_space<vmem>>, %arg9: memref<16x16xbf16, #tpu.memory_space<vmem>>, %arg10: memref<1x16xf32, #tpu.memory_space<vmem>>, %arg11: memref<16x16xbf16, #tpu.memory_space<vmem>>, %arg12: memref<1x16xf32, #tpu.memory_space<vmem>>, %arg13: memref<16x16xbf16, #tpu.memory_space<vmem>>, %arg14: memref<1x16xf32, #tpu.memory_space<vmem>>, %arg15: memref<16x2xbf16, #tpu.memory_space<vmem>>, %arg16: memref<1x2xf32, #tpu.memory_space<vmem>>, %arg17: memref<2x2xf32, #tpu.memory_space<vmem>>) attributes {dimension_semantics = [], scalar_prefetch = 0 : i64, scratch_operands = 0 : i64, tpu.core_type = #tpu.core_type<tc>} {
    %c0 = arith.constant 0 : index
    %c0_0 = arith.constant 0 : index
    %0 = vector.load %arg1[%c0, %c0_0] : memref<16x16xbf16, #tpu.memory_space<vmem>>, vector<16x16xbf16>
    %c0_1 = arith.constant 0 : index
    %c0_2 = arith.constant 0 : index
    %1 = vector.load %arg0[%c0_1, %c0_2] : memref<16x50xbf16, #tpu.memory_space<vmem>>, vector<16x50xbf16>
    %c0_3 = arith.constant 0 : index
    %c0_4 = arith.constant 0 : index
    %2 = vector.load %arg3[%c0_3, %c0_4] : memref<50x16xbf16, #tpu.memory_space<vmem>>, vector<50x16xbf16>
    %cst = arith.constant dense<0.000000e+00> : vector<16x16xf32>
    %3 = tpu.matmul %1, %2, %cst {dimension_numbers = #tpu.dot_dimension_numbers<[1], [0], [0], [1], [0, 0, 1, 1], [], []>} : vector<16x50xbf16>, vector<50x16xbf16>, vector<16x16xf32> -> vector<16x16xf32>
    %4 = arith.truncf %3 : vector<16x16xf32> to vector<16x16xbf16>
    %cst_5 = arith.constant dense<0.000000e+00> : vector<16x16xf32>
    %5 = tpu.matmul %0, %4, %cst_5 {dimension_numbers = #tpu.dot_dimension_numbers<[1], [0], [0], [1], [0, 0, 1, 1], [], []>} : vector<16x16xbf16>, vector<16x16xbf16>, vector<16x16xf32> -> vector<16x16xf32>
    %c0_6 = arith.constant 0 : index
    %c0_7 = arith.constant 0 : index
    %6 = vector.load %arg4[%c0_6, %c0_7] : memref<1x16xf32, #tpu.memory_space<vmem>>, vector<1x16xf32>
    %7 = vector.broadcast %6 : vector<1x16xf32> to vector<16x16xf32>
    %8 = arith.addf %5, %7 : vector<16x16xf32>
    %cst_8 = arith.constant 0.000000e+00 : f32
    %9 = vector.broadcast %cst_8 : f32 to vector<16x16xf32>
    %10 = arith.maximumf %8, %9 : vector<16x16xf32>
    %11 = arith.truncf %10 : vector<16x16xf32> to vector<16x16xbf16>
    %c0_9 = arith.constant 0 : index
    %c0_10 = arith.constant 0 : index
    %12 = vector.load %arg5[%c0_9, %c0_10] : memref<16x16xbf16, #tpu.memory_space<vmem>>, vector<16x16xbf16>
    %cst_11 = arith.constant dense<0.000000e+00> : vector<16x16xf32>
    %13 = tpu.matmul %11, %12, %cst_11 {dimension_numbers = #tpu.dot_dimension_numbers<[1], [0], [0], [1], [0, 0, 1, 1], [], []>} : vector<16x16xbf16>, vector<16x16xbf16>, vector<16x16xf32> -> vector<16x16xf32>
    %14 = arith.truncf %13 : vector<16x16xf32> to vector<16x16xbf16>
    %cst_12 = arith.constant dense<0.000000e+00> : vector<16x16xf32>
    %15 = tpu.matmul %0, %14, %cst_12 {dimension_numbers = #tpu.dot_dimension_numbers<[1], [0], [0], [1], [0, 0, 1, 1], [], []>} : vector<16x16xbf16>, vector<16x16xbf16>, vector<16x16xf32> -> vector<16x16xf32>
    %c0_13 = arith.constant 0 : index
    %c0_14 = arith.constant 0 : index
    %16 = vector.load %arg6[%c0_13, %c0_14] : memref<1x16xf32, #tpu.memory_space<vmem>>, vector<1x16xf32>
    %17 = vector.broadcast %16 : vector<1x16xf32> to vector<16x16xf32>
    %18 = arith.addf %15, %17 : vector<16x16xf32>
    %cst_15 = arith.constant 0.000000e+00 : f32
    %19 = vector.broadcast %cst_15 : f32 to vector<16x16xf32>
    %20 = arith.maximumf %18, %19 : vector<16x16xf32>
    %21 = arith.truncf %20 : vector<16x16xf32> to vector<16x16xbf16>
    %c0_16 = arith.constant 0 : index
    %c0_17 = arith.constant 0 : index
    %22 = vector.load %arg7[%c0_16, %c0_17] : memref<16x16xbf16, #tpu.memory_space<vmem>>, vector<16x16xbf16>
    %cst_18 = arith.constant dense<0.000000e+00> : vector<16x16xf32>
    %23 = tpu.matmul %21, %22, %cst_18 {dimension_numbers = #tpu.dot_dimension_numbers<[1], [0], [0], [1], [0, 0, 1, 1], [], []>} : vector<16x16xbf16>, vector<16x16xbf16>, vector<16x16xf32> -> vector<16x16xf32>
    %24 = arith.truncf %23 : vector<16x16xf32> to vector<16x16xbf16>
    %cst_19 = arith.constant dense<0.000000e+00> : vector<16x16xf32>
    %25 = tpu.matmul %0, %24, %cst_19 {dimension_numbers = #tpu.dot_dimension_numbers<[1], [0], [0], [1], [0, 0, 1, 1], [], []>} : vector<16x16xbf16>, vector<16x16xbf16>, vector<16x16xf32> -> vector<16x16xf32>
    %c0_20 = arith.constant 0 : index
    %c0_21 = arith.constant 0 : index
    %26 = vector.load %arg8[%c0_20, %c0_21] : memref<1x16xf32, #tpu.memory_space<vmem>>, vector<1x16xf32>
    %27 = vector.broadcast %26 : vector<1x16xf32> to vector<16x16xf32>
    %28 = arith.addf %25, %27 : vector<16x16xf32>
    %cst_22 = arith.constant 0.000000e+00 : f32
    %29 = vector.broadcast %cst_22 : f32 to vector<16x16xf32>
    %30 = arith.maximumf %28, %29 : vector<16x16xf32>
    %31 = arith.truncf %30 : vector<16x16xf32> to vector<16x16xbf16>
    %c0_23 = arith.constant 0 : index
    %c0_24 = arith.constant 0 : index
    %32 = vector.load %arg9[%c0_23, %c0_24] : memref<16x16xbf16, #tpu.memory_space<vmem>>, vector<16x16xbf16>
    %cst_25 = arith.constant dense<0.000000e+00> : vector<16x16xf32>
    %33 = tpu.matmul %31, %32, %cst_25 {dimension_numbers = #tpu.dot_dimension_numbers<[1], [0], [0], [1], [0, 0, 1, 1], [], []>} : vector<16x16xbf16>, vector<16x16xbf16>, vector<16x16xf32> -> vector<16x16xf32>
    %34 = arith.truncf %33 : vector<16x16xf32> to vector<16x16xbf16>
    %cst_26 = arith.constant dense<0.000000e+00> : vector<16x16xf32>
    %35 = tpu.matmul %0, %34, %cst_26 {dimension_numbers = #tpu.dot_dimension_numbers<[1], [0], [0], [1], [0, 0, 1, 1], [], []>} : vector<16x16xbf16>, vector<16x16xbf16>, vector<16x16xf32> -> vector<16x16xf32>
    %c0_27 = arith.constant 0 : index
    %c0_28 = arith.constant 0 : index
    %36 = vector.load %arg10[%c0_27, %c0_28] : memref<1x16xf32, #tpu.memory_space<vmem>>, vector<1x16xf32>
    %37 = vector.broadcast %36 : vector<1x16xf32> to vector<16x16xf32>
    %38 = arith.addf %35, %37 : vector<16x16xf32>
    %cst_29 = arith.constant 0.000000e+00 : f32
    %39 = vector.broadcast %cst_29 : f32 to vector<16x16xf32>
    %40 = arith.maximumf %38, %39 : vector<16x16xf32>
    %41 = arith.truncf %40 : vector<16x16xf32> to vector<16x16xbf16>
    %c0_30 = arith.constant 0 : index
    %c0_31 = arith.constant 0 : index
    %42 = vector.load %arg11[%c0_30, %c0_31] : memref<16x16xbf16, #tpu.memory_space<vmem>>, vector<16x16xbf16>
    %cst_32 = arith.constant dense<0.000000e+00> : vector<16x16xf32>
    %43 = tpu.matmul %41, %42, %cst_32 {dimension_numbers = #tpu.dot_dimension_numbers<[1], [0], [0], [1], [0, 0, 1, 1], [], []>} : vector<16x16xbf16>, vector<16x16xbf16>, vector<16x16xf32> -> vector<16x16xf32>
    %44 = arith.truncf %43 : vector<16x16xf32> to vector<16x16xbf16>
    %cst_33 = arith.constant dense<0.000000e+00> : vector<16x16xf32>
    %45 = tpu.matmul %0, %44, %cst_33 {dimension_numbers = #tpu.dot_dimension_numbers<[1], [0], [0], [1], [0, 0, 1, 1], [], []>} : vector<16x16xbf16>, vector<16x16xbf16>, vector<16x16xf32> -> vector<16x16xf32>
    %c0_34 = arith.constant 0 : index
    %c0_35 = arith.constant 0 : index
    %46 = vector.load %arg12[%c0_34, %c0_35] : memref<1x16xf32, #tpu.memory_space<vmem>>, vector<1x16xf32>
    %47 = vector.broadcast %46 : vector<1x16xf32> to vector<16x16xf32>
    %48 = arith.addf %45, %47 : vector<16x16xf32>
    %49 = arith.truncf %48 : vector<16x16xf32> to vector<16x16xbf16>
    %c0_36 = arith.constant 0 : index
    %c0_37 = arith.constant 0 : index
    %50 = vector.load %arg2[%c0_36, %c0_37] : memref<2x16xbf16, #tpu.memory_space<vmem>>, vector<2x16xbf16>
    %cst_38 = arith.constant dense<0.000000e+00> : vector<2x16xf32>
    %51 = tpu.matmul %50, %49, %cst_38 {dimension_numbers = #tpu.dot_dimension_numbers<[1], [0], [0], [1], [0, 0, 1, 1], [], []>} : vector<2x16xbf16>, vector<16x16xbf16>, vector<2x16xf32> -> vector<2x16xf32>
    %52 = arith.truncf %51 : vector<2x16xf32> to vector<2x16xbf16>
    %c0_39 = arith.constant 0 : index
    %c0_40 = arith.constant 0 : index
    %53 = vector.load %arg13[%c0_39, %c0_40] : memref<16x16xbf16, #tpu.memory_space<vmem>>, vector<16x16xbf16>
    %cst_41 = arith.constant dense<0.000000e+00> : vector<2x16xf32>
    %54 = tpu.matmul %52, %53, %cst_41 {dimension_numbers = #tpu.dot_dimension_numbers<[1], [0], [0], [1], [0, 0, 1, 1], [], []>} : vector<2x16xbf16>, vector<16x16xbf16>, vector<2x16xf32> -> vector<2x16xf32>
    %c0_42 = arith.constant 0 : index
    %c0_43 = arith.constant 0 : index
    %55 = vector.load %arg14[%c0_42, %c0_43] : memref<1x16xf32, #tpu.memory_space<vmem>>, vector<1x16xf32>
    %56 = vector.broadcast %55 : vector<1x16xf32> to vector<2x16xf32>
    %57 = arith.addf %54, %56 : vector<2x16xf32>
    %cst_44 = arith.constant 0.000000e+00 : f32
    %58 = vector.broadcast %cst_44 : f32 to vector<2x16xf32>
    %59 = arith.maximumf %57, %58 : vector<2x16xf32>
    %60 = arith.truncf %59 : vector<2x16xf32> to vector<2x16xbf16>
    %c0_45 = arith.constant 0 : index
    %c0_46 = arith.constant 0 : index
    %61 = vector.load %arg15[%c0_45, %c0_46] : memref<16x2xbf16, #tpu.memory_space<vmem>>, vector<16x2xbf16>
    %cst_47 = arith.constant dense<0.000000e+00> : vector<2x2xf32>
    %62 = tpu.matmul %60, %61, %cst_47 {dimension_numbers = #tpu.dot_dimension_numbers<[1], [0], [0], [1], [0, 0, 1, 1], [], []>} : vector<2x16xbf16>, vector<16x2xbf16>, vector<2x2xf32> -> vector<2x2xf32>
    %c0_48 = arith.constant 0 : index
    %c0_49 = arith.constant 0 : index
    %63 = vector.load %arg16[%c0_48, %c0_49] : memref<1x2xf32, #tpu.memory_space<vmem>>, vector<1x2xf32>
    %64 = vector.broadcast %63 : vector<1x2xf32> to vector<2x2xf32>
    %65 = arith.addf %62, %64 : vector<2x2xf32>
    %c0_50 = arith.constant 0 : index
    %c0_51 = arith.constant 0 : index
    %66 = vector.load %arg17[%c0_50, %c0_51] : memref<2x2xf32, #tpu.memory_space<vmem>>, vector<2x2xf32>
    tpu.vector_store %arg17[%c0_50, %c0_51], %65 {strides = array<i32>} : memref<2x2xf32, #tpu.memory_space<vmem>>, vector<2x2xf32>,
    return
  }
}

</mosaic_0001>

<bundles_post_ra>
// kernel: tpu_custom_call.1
= control target key start
LH: loop header
LB: loop body
LE: loop exit
PB: predicated region body
PF: predicated region fallthrough
CT: control target
= control target key end

     0   :  { %s1256_s0 = inlined_call_operand.vmem [shape: bf16[16,50], index: 0, kind: input, shape index: {}]   ;;  %s1257_s1 = inlined_call_operand.vmem [shape: bf16[16,16], index: 1, kind: input, shape index: {}]   ;;  %s1258_s2 = inlined_call_operand.hbm [shape: bf16[2,16], index: 2, kind: input, shape index: {}]   ;;  %s1259_s3 = inlined_call_operand.vmem [shape: bf16[50,16], index: 3, kind: input, shape index: {}]   ;;  %s1260_s4 = inlined_call_operand.vmem [shape: f32[1,16], index: 4, kind: input, shape index: {}]   ;;  %s1261_s5 = inlined_call_operand.vmem [shape: bf16[16,16], index: 5, kind: input, shape index: {}]   ;;  %s1262_s6 = inlined_call_operand.vmem [shape: f32[1,16], index: 6, kind: input, shape index: {}]   ;;  %s1263_s7 = inlined_call_operand.vmem [shape: bf16[16,16], index: 7, kind: input, shape index: {}]   ;;  %s1264_s8 = inlined_call_operand.vmem [shape: f32[1,16], index: 8, kind: input, shape index: {}]   ;;  %s1265_s9 = inlined_call_operand.vmem [shape: bf16[16,16], index: 9, kind: input, shape index: {}]   ;;  %s1266_s10 = inlined_call_operand.vmem [shape: f32[1,16], index: 10, kind: input, shape index: {}]   ;;  %s1267_s11 = inlined_call_operand.vmem [shape: bf16[16,16], index: 11, kind: input, shape index: {}]   ;;  %s1268_s12 = inlined_call_operand.vmem [shape: f32[1,16], index: 12, kind: input, shape index: {}]   ;;  %s1269_s13 = inlined_call_operand.vmem [shape: bf16[16,16], index: 13, kind: input, shape index: {}]   ;;  %s1270_s14 = inlined_call_operand.vmem [shape: f32[1,16], index: 14, kind: input, shape index: {}]   ;;  %s1271_s15 = inlined_call_operand.vmem [shape: bf16[16,2], index: 15, kind: input, shape index: {}]   ;;  %s1272_s16 = inlined_call_operand.vmem [shape: f32[1,2], index: 16, kind: input, shape index: {}]   ;;  %s1273_s17 = inlined_call_operand.hbm [shape: f32[2,2], index: 17, kind: output, shape index: {}]  }
   0x1   :  { %1274 = sst [smem:[#allocation8_spill]] %s1256_s0 }
   0x2   :  { %1275 = sst [smem:[#allocation9_spill]] %s1257_s1 }
   0x3   :  { %22 = vsyncpa [#allocation3], 0 }
   0x4   :  { %23 = vsyncpa [#allocation4], 0  ;;  %s1020_s24 = smov [#allocation2]   ;;  %s972_s28 = scalar_lea.hbm %s1258_s2, 16 }
   0x5   :  { %s34_s25 = sshll.u32 %s1020_s24, 4  ;;  %p973_p0 = scmp.ne.s32.totalorder %s1258_s2, %s972_s28  ;;  %s35_s25 = int_to_ptr.vmem [resolvable:$true] %s34_s25 }
   0x6   :  { %p976_p1 = scmp.lt.u32.totalorder %s972_s28, %s1258_s2 }
   0x8   :  { %p978_p2 = pnand %p976_p1, %p973_p0 }
   0xa   :  { %981 = shalt.err (!%p978_p2)
}
   0xb   :  { %s982_s19 = scalar_lea.vmem %s35_s25, 16  ;;  %s986_s1 = scalar_lea.vmem %s35_s25, 32 }
   0xc   :  { %p983_p3 = scmp.ne.s32.totalorder %s35_s25, %s982_s19  ;;  %p987_p4 = scmp.lt.s32.totalorder %s35_s25, %s35_s25 }
   0xd   :  { %p988_p5 = scmp.lt.s32.totalorder %s986_s1, %s982_s19 }
   0xf   :  { %p989_p6 = por %p988_p5, %p987_p4 }
  0x11   :  { %p990_p7 = pnand %p989_p6, %p983_p3 }
  0x13   :  { %993 = shalt.err (!%p990_p7)
}
  0x14   :  { %37 = dma.hbm_to_vmem [thread:$0]  %s1258_s2, 16, %s35_s25, [#allocation3]  }
  0x15   :  { %1016 = dma.done.wait [#allocation3], 16  }
  0x16   :  { %1017 = vsyncadd [#allocation3], 4294967280  ;;  %v1021_v0 = vmov 0.0   ;;  %vm1022_vm0 = vmmov 0   ;;  %v960_v1 = vld [vmem:[%s1259_s3] sm:$0xff]   ;;  %v961_v2 = vld [vmem:[%s1259_s3 + $0x8] sm:$0xff]  }
  0x17   :  { %872 = vmatprep.subr.bf16.mxu0 %v1021_v0  ;;  %880 = vmatprep.mubr.msk.bf16.mxu0 %vm1022_vm0, %v1021_v0  ;;  %v962_v3 = vld [vmem:[%s1259_s3 + $0x10] sm:$0xff]   ;;  %v963_v4 = vld [vmem:[%s1259_s3 + $0x18] ss:$0 sps:$4 sm:$0x11]   ;;  %vm111_vm1 = vcmask 1040384   ;;  %s1276_s30 = sld [smem:[#allocation8_spill]] }
  0x18   :  { %884 = vmatprep.subr.bf16.mxu1 %v1021_v0  ;;  %886 = vmatprep.mubr.msk.bf16.mxu1 %vm1022_vm0, %v1021_v0  ;;  %v113_v5 = vsel %vm111_vm1, %v963_v4, 0  ;;  %vm107_vm2 = vcmask 408576   ;;  %s1277_s19 = sld [smem:[#allocation9_spill]]  ;;  %vm169_vm3 = vcmask 130048   ;;  %v966_v13 = vld [vmem:[%s1261_s5] sm:$0xff]   ;;  %vm794_vm4 = vcmask 9216  }
  0x19   :  { %873 = vmatpush3.bf16.msra.mxu0 %v960_v1  ;;  %v817_v14 = vld [vmem:[%s1260_s4] ss:$0 sm:$0xff] }
  0x1a   :  { %874 = vmatprep.subr.bf16.mxu0 %v1021_v0  ;;  %v967_v29 = vld [vmem:[%s1263_s7] sm:$0xff]  }
  0x1b   :  { %v822_v30 = vld [vmem:[%s1262_s6] ss:$0 sm:$0xff] }
  0x1c   :  { %v968_v45 = vld [vmem:[%s1265_s9] sm:$0xff]  }
  0x1d   :  { %875 = vmatpush3.bf16.msra.mxu0 %v961_v2  ;;  %v964_v6 = vld [vmem:[%s1276_s30] sm:$0xff]  }
  0x1e   :  { %876 = vmatprep.subr.bf16.mxu0 %v1021_v0  ;;  %v1156_v12 = vld [vmem:[%s1277_s19] sm:$0xff]   ;;  %s1023_s19 = smov [#allocation5]  }
  0x1f   :  { %v826_v46 = vld [vmem:[%s1264_s8] ss:$0 sm:$0xff] }
  0x20   :  { %v969_v61 = vld [vmem:[%s1267_s11] sm:$0xff]  }
  0x21   :  { %877 = vmatpush3.bf16.msra.mxu0 %v962_v3  ;;  %v830_v62 = vld [vmem:[%s1266_s10] ss:$0 sm:$0xff] }
  0x22   :  { %878 = vmatprep.subr.bf16.mxu0 %v1021_v0 }
  0x25   :  { %879 = vmatpush3.bf16.msra.mxu0 %v113_v5 }
  0x26   :  { %902 = vmatprep.subr.bf16.mxu0 %v1021_v0 }
  0x28   :  { %881 = vmatmul.mubr.msk.bf16.vlgmr.msra.gmra.mrb[0].mxu0 %vm107_vm2, %v964_v6 }
  0x29   :  { %904 = vmatprep.mubr.msk.bf16.mxu0 %vm1022_vm0, %v1021_v0  ;;  %903 = vmatpush3.bf16.msra.mxu0 %v967_v29  ;;  %v971_v29 = vld [vmem:[%s1271_s15] sm:$0xff]   ;;  %s802_s15 = sshll.u32 %s1023_s19, 4  ;;  %s803_s15 = int_to_ptr.vmem [resolvable:$true] %s802_s15 }
  0x2a   :  { %914 = vmatprep.subr.bf16.mxu0 %v1021_v0  ;;  %p999_p9 = scmp.lt.s32.totalorder %s803_s15, %s803_s15 }
  0xfb   :  { %v149_v7 = vpop.f32.mrb[0].mxu0 }
  0xfc   :  { %v882_v8 = vpop.f32.mrb[1].mxu0 }
  0xfd   :  { %v152_v9 = vpop.f32.mrb[2].mxu0 }
  0xfe   :  { %v156_v10 = vpack.c.bf16 %v152_v9, %v149_v7  ;;  %v883_v11 = vpop.f32.mrb[3].mxu0 }
 0x100   :  { %885 = vmatpush3.bf16.msra.mxu1 %v156_v10 }
 0x101   :  { %890 = vmatprep.subr.bf16.mxu1 %v1021_v0 }
 0x103   :  { %887 = vmatmul.mubr.msk.bf16.vlgmr.msra.gmra.mrb[0].mxu1 %vm169_vm3, %v1156_v12 }
 0x104   :  { %892 = vmatprep.mubr.msk.bf16.mxu1 %vm1022_vm0, %v1021_v0  ;;  %891 = vmatpush3.bf16.msra.mxu1 %v966_v13 }
 0x105   :  { %896 = vmatprep.subr.bf16.mxu1 %v1021_v0 }
 0x1d6   :  { %v207_v15 = vpop.f32.mrb[0].mxu1 }
 0x1d7   :  { %v208_v16 = vadd.f32 %v817_v14, %v207_v15  ;;  %v888_v17 = vpop.f32.mrb[1].mxu1  ;;  %v970_v15 = vld [vmem:[%s1269_s13] sm:$0xff]  }
 0x1d8   :  { %v210_v18 = vpop.f32.mrb[2].mxu1 }
 0x1d9   :  { %v211_v19 = vadd.f32 %v817_v14, %v210_v18  ;;  %v889_v20 = vpop.f32.mrb[3].mxu1  ;;  %v214_v21 = vmax.f32 %v208_v16, 0.0  ;;  %v834_v16 = vld [vmem:[%s1268_s12] ss:$0 sm:$0xff] }
 0x1db   :  { %v215_v22 = vmax.f32 %v211_v19, 0.0 }
 0x1dd   :  { %v216_v23 = vpack.c.bf16 %v215_v22, %v214_v21 }
 0x1df   :  { %893 = vmatmul.mubr.msk.bf16.vlgmr.msra.gmra.mrb[4].mxu1 %vm169_vm3, %v216_v23 }
 0x1e0   :  { %898 = vmatprep.mubr.msk.bf16.mxu1 %vm1022_vm0, %v1021_v0 }
 0x2b2   :  { %v262_v24 = vpop.f32.mrb[4].mxu1 }
 0x2b3   :  { %v894_v25 = vpop.f32.mrb[5].mxu1 }
 0x2b4   :  { %v265_v26 = vpop.f32.mrb[6].mxu1 }
 0x2b5   :  { %v269_v27 = vpack.c.bf16 %v265_v26, %v262_v24  ;;  %v895_v28 = vpop.f32.mrb[7].mxu1 }
 0x2b7   :  { %897 = vmatpush3.bf16.msra.mxu1 %v269_v27 }
 0x2b8   :  { %908 = vmatprep.subr.bf16.mxu1 %v1021_v0 }
 0x2ba   :  { %899 = vmatmul.mubr.msk.bf16.vlgmr.msra.gmra.mrb[8].mxu1 %vm169_vm3, %v1156_v12 }
 0x2bb   :  { %910 = vmatprep.mubr.msk.bf16.mxu1 %vm1022_vm0, %v1021_v0 }
 0x38d   :  { %v311_v31 = vpop.f32.mrb[8].mxu1 }
 0x38e   :  { %v312_v32 = vadd.f32 %v822_v30, %v311_v31  ;;  %v900_v33 = vpop.f32.mrb[9].mxu1 }
 0x38f   :  { %v314_v34 = vpop.f32.mrb[10].mxu1 }
 0x390   :  { %v315_v35 = vadd.f32 %v822_v30, %v314_v34  ;;  %v901_v36 = vpop.f32.mrb[11].mxu1  ;;  %v318_v37 = vmax.f32 %v312_v32, 0.0  ;;  %v837_v30 = vld [vmem:[%s1270_s14] ss:$0 sm:$0xff]  ;;  %s994_s14 = scalar_lea.vmem %s803_s15, 32 }
 0x391   :  { %p995_p8 = scmp.ne.s32.totalorder %s803_s15, %s994_s14  ;;  %p1000_p10 = scmp.lt.s32.totalorder %s994_s14, %s994_s14 }
 0x392   :  { %v319_v38 = vmax.f32 %v315_v35, 0.0 }
 0x393   :  { %p1001_p11 = por %p1000_p10, %p999_p9 }
 0x394   :  { %v320_v39 = vpack.c.bf16 %v319_v38, %v318_v37  ;;  %v840_v37 = vld [vmem:[%s1272_s16] ss:$0 sm:$0xff] }
 0x395   :  { %p1002_p12 = pnand %p1001_p11, %p995_p8 }
 0x396   :  { %905 = vmatmul.mubr.msk.bf16.vlgmr.msra.gmra.mrb[4].mxu0 %vm169_vm3, %v320_v39 }
 0x397   :  { %916 = vmatprep.mubr.msk.bf16.mxu0 %vm1022_vm0, %v1021_v0  ;;  %915 = vmatpush3.bf16.msra.mxu0 %v968_v45 }
 0x398   :  { %926 = vmatprep.subr.bf16.mxu0 %v1021_v0 }
 0x469   :  { %v366_v40 = vpop.f32.mrb[4].mxu0 }
 0x46a   :  { %v906_v41 = vpop.f32.mrb[5].mxu0 }
 0x46b   :  { %v369_v42 = vpop.f32.mrb[6].mxu0 }
 0x46c   :  { %v373_v43 = vpack.c.bf16 %v369_v42, %v366_v40  ;;  %v907_v44 = vpop.f32.mrb[7].mxu0 }
 0x46e   :  { %909 = vmatpush3.bf16.msra.mxu1 %v373_v43 }
 0x46f   :  { %920 = vmatprep.subr.bf16.mxu1 %v1021_v0 }
 0x471   :  { %911 = vmatmul.mubr.msk.bf16.vlgmr.msra.gmra.mrb[12].mxu1 %vm169_vm3, %v1156_v12 }
 0x472   :  { %922 = vmatprep.mubr.msk.bf16.mxu1 %vm1022_vm0, %v1021_v0 }
 0x544   :  { %v415_v47 = vpop.f32.mrb[12].mxu1 }
 0x545   :  { %v416_v48 = vadd.f32 %v826_v46, %v415_v47  ;;  %v912_v49 = vpop.f32.mrb[13].mxu1 }
 0x546   :  { %v418_v50 = vpop.f32.mrb[14].mxu1 }
 0x547   :  { %v419_v51 = vadd.f32 %v826_v46, %v418_v50  ;;  %v913_v52 = vpop.f32.mrb[15].mxu1  ;;  %v422_v53 = vmax.f32 %v416_v48, 0.0 }
 0x549   :  { %v423_v54 = vmax.f32 %v419_v51, 0.0 }
 0x54b   :  { %v424_v55 = vpack.c.bf16 %v423_v54, %v422_v53 }
 0x54d   :  { %917 = vmatmul.mubr.msk.bf16.vlgmr.msra.gmra.mrb[8].mxu0 %vm169_vm3, %v424_v55 }
 0x54e   :  { %928 = vmatprep.mubr.msk.bf16.mxu0 %vm1022_vm0, %v1021_v0  ;;  %927 = vmatpush3.bf16.msra.mxu0 %v969_v61 }
 0x54f   :  { %938 = vmatprep.subr.bf16.mxu0 %v1021_v0 }
 0x620   :  { %v470_v56 = vpop.f32.mrb[8].mxu0 }
 0x621   :  { %v918_v57 = vpop.f32.mrb[9].mxu0 }
 0x622   :  { %v473_v58 = vpop.f32.mrb[10].mxu0 }
 0x623   :  { %v477_v59 = vpack.c.bf16 %v473_v58, %v470_v56  ;;  %v919_v60 = vpop.f32.mrb[11].mxu0 }
 0x625   :  { %921 = vmatpush3.bf16.msra.mxu1 %v477_v59 }
 0x626   :  { %932 = vmatprep.subr.bf16.mxu1 %v1021_v0 }
 0x628   :  { %923 = vmatmul.mubr.msk.bf16.vlgmr.msra.gmra.mrb[16].mxu1 %vm169_vm3, %v1156_v12 }
 0x629   :  { %934 = vmatprep.mubr.msk.bf16.mxu1 %vm1022_vm0, %v1021_v0 }
 0x6fb   :  { %v519_v63 = vpop.f32.mrb[16].mxu1 }
 0x6fc   :  { %v520_v1 = vadd.f32 %v830_v62, %v519_v63  ;;  %v924_v2 = vpop.f32.mrb[17].mxu1 }
 0x6fd   :  { %v522_v3 = vpop.f32.mrb[18].mxu1 }
 0x6fe   :  { %v523_v4 = vadd.f32 %v830_v62, %v522_v3  ;;  %v925_v5 = vpop.f32.mrb[19].mxu1  ;;  %v526_v6 = vmax.f32 %v520_v1, 0.0 }
 0x700   :  { %v527_v7 = vmax.f32 %v523_v4, 0.0 }
 0x702   :  { %v528_v8 = vpack.c.bf16 %v527_v7, %v526_v6 }
 0x704   :  { %929 = vmatmul.mubr.msk.bf16.vlgmr.msra.gmra.mrb[12].mxu0 %vm169_vm3, %v528_v8 }
 0x705   :  { %940 = vmatprep.mubr.msk.bf16.mxu0 %vm1022_vm0, %v1021_v0 }
 0x7d7   :  { %v574_v9 = vpop.f32.mrb[12].mxu0 }
 0x7d8   :  { %v930_v10 = vpop.f32.mrb[13].mxu0 }
 0x7d9   :  { %v577_v11 = vpop.f32.mrb[14].mxu0 }
 0x7da   :  { %v581_v13 = vpack.c.bf16 %v577_v11, %v574_v9  ;;  %v931_v14 = vpop.f32.mrb[15].mxu0 }
 0x7dc   :  { %933 = vmatpush3.bf16.msra.mxu1 %v581_v13 }
 0x7dd   :  { %944 = vmatprep.subr.bf16.mxu1 %v1021_v0 }
 0x7df   :  { %935 = vmatmul.mubr.msk.bf16.vlgmr.msra.gmra.mrb[20].mxu1 %vm169_vm3, %v1156_v12  ;;  %v631_v12 = vld [vmem:[#allocation2] sm:$0x1] }
 0x7e0   :  { %946 = vmatprep.mubr.msk.bf16.mxu1 %vm1022_vm0, %v1021_v0  ;;  %945 = vmatpush3.bf16.msra.mxu1 %v970_v15 }
 0x8b2   :  { %v623_v17 = vpop.f32.mrb[20].mxu1 }
 0x8b3   :  { %v936_v18 = vpop.f32.mrb[21].mxu1  ;;  %v624_v20 = vadd.f32 %v834_v16, %v623_v17 }
 0x8b4   :  { %v626_v19 = vpop.f32.mrb[22].mxu1 }
 0x8b5   :  { %v627_v21 = vadd.f32 %v834_v16, %v626_v19  ;;  %v937_v22 = vpop.f32.mrb[23].mxu1 }
 0x8b7   :  { %v630_v23 = vpack.c.bf16 %v627_v21, %v624_v20 }
 0x8b9   :  { %939 = vmatpush3.bf16.msra.mxu0 %v630_v23 }
 0x8ba   :  { %950 = vmatprep.subr.bf16.mxu0 %v1021_v0 }
 0x8bc   :  { %941 = vmatmul.mubr.msk.bf16.vlgmr.msra.gmra.mrb[16].mxu0 %vm169_vm3, %v631_v12 }
 0x8bd   :  { %952 = vmatprep.mubr.msk.bf16.mxu0 %vm1022_vm0, %v1021_v0  ;;  %951 = vmatpush3.bf16.msra.mxu0 %v971_v29 }
 0x98f   :  { %v669_v24 = vpop.f32.mrb[16].mxu0 }
 0x990   :  { %v675_v25 = vpack.c.bf16 %v669_v24, %v669_v24  ;;  %v942_v26 = vpop.f32.mrb[17].mxu0 }
 0x991   :  { %v672_v27 = vpop.f32.mrb[18].mxu0 }
 0x992   :  { %v943_v28 = vpop.f32.mrb[19].mxu0  ;;  %947 = vmatmul.mubr.msk.bf16.vlgmr.msra.gmra.mrb[24].mxu1 %vm169_vm3, %v675_v25 }
 0xa65   :  { %v728_v31 = vpop.f32.mrb[24].mxu1 }
 0xa66   :  { %v729_v32 = vadd.f32 %v837_v30, %v728_v31  ;;  %v948_v33 = vpop.f32.mrb[25].mxu1 }
 0xa67   :  { %v731_v0 = vpop.f32.mrb[26].mxu1 }
 0xa68   :  { %v734_v34 = vmax.f32 %v729_v32, 0.0  ;;  %v949_v35 = vpop.f32.mrb[27].mxu1 }
 0xa6a   :  { %v735_v36 = vpack.c.bf16 %v734_v34, %v734_v34 }
 0xa6c   :  { %953 = vmatmul.mubr.msk.bf16.vlgmr.msra.gmra.mrb[20].mxu0 %vm169_vm3, %v735_v36 }
 0xb3f   :  { %v788_v38 = vpop.f32.mrb[20].mxu0 }
 0xb40   :  { %v789_v39 = vadd.f32 %v840_v37, %v788_v38  ;;  %v954_v40 = vpop.f32.mrb[21].mxu0 }
 0xb41   :  { %v791_v41 = vpop.f32.mrb[22].mxu0 }
 0xb42   :  { %v955_v42 = vpop.f32.mrb[23].mxu0  ;;  %795 = vst.msk [vmem:[#allocation5] sm:$0x3] %vm794_vm4, %v789_v39 }
 0xb43   :  { %1005 = shalt.err (!%p1002_p12)
}
 0xb44   :  { %s1006_s16 = scalar_lea.hbm %s1273_s17, 32 }
 0xb45   :  { %p1007_p13 = scmp.ne.s32.totalorder %s1273_s17, %s1006_s16  ;;  %p1010_p0 = scmp.lt.u32.totalorder %s1006_s16, %s1273_s17 }
 0xb47   :  { %p1012_p1 = pnand %p1010_p0, %p1007_p13 }
 0xb49   :  { %1015 = shalt.err (!%p1012_p1)
}
 0xb4a   :  { %805 = dma.vmem_to_hbm [thread:$0]  %s803_s15, 32, %s1273_s17, [#allocation4]  }
 0xb4b   :  { %1018 = dma.done.wait [#allocation4], 32  }
 0xb4c   :  { %1019 = vsyncadd [#allocation4], 4294967264 }
 0xb4d   :  { %809 = vsyncpa [#allocation3], 1 }
 0xb4e   :  { %810 = vsyncpa [#allocation4], 1 }

</bundles_post_ra>
